<compile_context>
chip_gen: v6e
topology: v6e:2x2x1
jax: 0.10.0
libtpu: 0.0.40
codegen_flags: <defaults>
</compile_context>

<pallas_src>
import jax
import jax.numpy as jnp
from jax.experimental import pallas as pl
from jax.experimental.pallas import tpu as pltpu


def _sigmoid(x):
    return 1.0 / (1.0 + jnp.exp(-x))


def _round_up(x, m):
    return ((x + m - 1) // m) * m


def _full_spec(shape):
    return pl.BlockSpec(tuple(shape), lambda i, _n=len(shape): (0,) * _n)


def _choose_batch_block(b, b_blk):
    # Largest divisor of b that is <= b_blk -> never forces a per-step batch pad.
    # (On v7x prefer b_blk <= b // 2 so the "parallel" axis spans both TCs.)
    B = max(1, min(b_blk, b))
    while b % B:
        B -= 1
    return B


# -----------------------------------------------------------------------------
# One-time parameter preparation (hoisted out of the decode step)
# -----------------------------------------------------------------------------
def prepare_decoder_params(raw, *, tile_v=2048):
    f32 = jnp.float32
    H = raw["W_out1"].shape[0]
    n = 2 * H
    E = raw["W_xc"].shape[0]
    V = raw["W_out2"].shape[0]

    V128 = _round_up(V, 128)
    TILE_V = _round_up(min(int(tile_v), V128), 128)
    V_pad = _round_up(V, TILE_V)

    w2_t_pad = jnp.pad(raw["W_out2"].astype(f32).T, ((0, 0), (0, V_pad - V)))
    # Padded vocab columns get a very negative bias so exp() -> 0 exactly.
    b2_pad = jnp.pad(raw["b_out2"].astype(f32).reshape(1, V),
                     ((0, 0), (0, V_pad - V)), constant_values=-1e9)

    return {
        "embedding": raw["embedding"].astype(f32),
        # x_context + LSTM cell (+ fused decode_proj)
        "W_xc_T": raw["W_xc"].astype(f32).T,                  # (2H+E, E)
        "b_xc_r": raw["b_xc"].astype(f32).reshape(1, E),
        "W_ih_T": raw["W_ih"].astype(f32).T,                  # (E, 4H)
        "W_hh_T": raw["W_hh"].astype(f32).T,                  # (H, 4H)
        "b_g": (raw["b_ih"] + raw["b_hh"]).astype(f32).reshape(1, 4 * H),
        "W_dec_T": raw["W_dec"].astype(f32).T,                # (2H, 2H)
        "b_dec_r": raw["b_dec"].astype(f32).reshape(1, n),
        # attention constants folded into one block: [W_c; v]
        "attn_par": jnp.concatenate([raw["W_c"].astype(f32).reshape(1, n),
                                     raw["v"].astype(f32).reshape(1, n)], axis=0),
        # pointer-gen + output head
        "W_pgen_r": raw["W_pgen"].astype(f32).reshape(1, -1),
        "b_pgen_r": raw["b_pgen"].astype(f32).reshape(1, 1),
        "W_out1_T": raw["W_out1"].astype(f32).T,              # (3H, H)
        "b_out1_r": raw["b_out1"].astype(f32).reshape(1, H),
        "W_out2_T_pad": w2_t_pad,                             # (H, V_pad)
        "b_out2_pad": b2_pad,                                 # (1, V_pad)
        # static sizes
        "H": H, "E": E, "n": n, "V": V, "V_pad": V_pad, "TILE_V": TILE_V,
    }


# -----------------------------------------------------------------------------
# Attention kernel (batch-blocked, lane-dense, coverage updated in place)
# -----------------------------------------------------------------------------
def _attention_kernel(dec_ref, enc_out_ref, enc_feat_ref, mask_ref, cov_ref,
                      par_ref, ct_ref, attn_ref, covout_ref):
    dec = dec_ref[...]                                        # (B, n)
    par = par_ref[...]                                        # (2, n)
    wc = par[0:1, :]                                          # (1, n)  W_c row
    v = par[1:2, :]                                           # (1, n)  v row
    cov = cov_ref[...]                                        # (B, t_k)
    # Encoder tensors may be stored bf16 in HBM: cast right after load.
    enc_out = enc_out_ref[...].astype(jnp.float32)            # (B, t_k, n)
    enc_feat = enc_feat_ref[...].astype(jnp.float32)          # (B, t_k, n)

    att = enc_feat + dec[:, None, :] + cov[:, :, None] * wc[:, None, :]
    e = jnp.tanh(att)                                         # EUP
    scores = jnp.sum(e * v[:, None, :], axis=-1)              # (B, t_k)

    # masked softmax: exp(s-m)*mask / sum(exp(s-m)*mask)
    m = jnp.max(scores, axis=-1, keepdims=True)
    p = jnp.exp(scores - m) * mask_ref[...]
    norm = jnp.sum(p, axis=-1, keepdims=True)
    attn = p * pl.reciprocal(norm, approx=False)              # (B, t_k)

    # context vector on the (idle) MXU: (B,1,t_k) @ (B,t_k,n)
    ct = jnp.einsum('bqk,bkn->bqn', attn[:, None, :], enc_out,
                    preferred_element_type=jnp.float32)[:, 0, :]

    ct_ref[...] = ct
    attn_ref[...] = attn
    covout_ref[...] = cov + attn


def attention_forward(p, encoder_outputs, encoder_feature, enc_padding_mask,
                      coverage, *, dec_fea=None, s_t_hat=None, b_blk=16):
    """Pallas version of Attention.forward (is_coverage=True)."""
    b, t_k, n = encoder_outputs.shape

    if dec_fea is None:
        # Standalone path (eval step==0); normally dec_fea comes fused from lstm_step.
        dec_fea = s_t_hat.astype(jnp.float32) @ p["W_dec_T"] + p["b_dec_r"]
    dec_fea = dec_fea.astype(jnp.float32)

    enc_feat = encoder_feature.reshape(b, t_k, n)
    mask = enc_padding_mask.astype(jnp.float32)
    cov = coverage.astype(jnp.float32)

    B = _choose_batch_block(b, b_blk)
    nb = b // B

    esz = jnp.dtype(encoder_outputs.dtype).itemsize
    stream_bytes = 2 * 2 * B * t_k * n * esz       # 2 streamed tensors x 2 buffers
    vmem_limit = None
    if stream_bytes > (20 << 20):
        vmem_limit = int(min(stream_bytes + (12 << 20), 60 << 20))

    out_shapes = (
        jax.ShapeDtypeStruct((b, n), jnp.float32),      # c_t
        jax.ShapeDtypeStruct((b, t_k), jnp.float32),    # attn_dist (lane dense)
        jax.ShapeDtypeStruct((b, t_k), jnp.float32),    # coverage  (lane dense)
    )

    c_t, attn, cov_out = pl.pallas_call(
        _attention_kernel,
        out_shape=out_shapes,
        grid_spec=pltpu.PrefetchScalarGridSpec(
            num_scalar_prefetch=0,
            grid=(nb,),
            in_specs=[
                pl.BlockSpec((B, n), lambda i: (i, 0)),            # dec_fea
                pl.BlockSpec((B, t_k, n), lambda i: (i, 0, 0)),    # encoder_outputs
                pl.BlockSpec((B, t_k, n), lambda i: (i, 0, 0)),    # encoder_feature
                pl.BlockSpec((B, t_k), lambda i: (i, 0)),          # mask
                pl.BlockSpec((B, t_k), lambda i: (i, 0)),          # coverage
                pl.BlockSpec((2, n), lambda i: (0, 0)),            # [W_c; v]
            ],
            out_specs=[
                pl.BlockSpec((B, n), lambda i: (i, 0)),
                pl.BlockSpec((B, t_k), lambda i: (i, 0)),
                pl.BlockSpec((B, t_k), lambda i: (i, 0)),
            ],
        ),
        input_output_aliases={4: 2},   # coverage updated in place
        compiler_params=pltpu.CompilerParams(
            dimension_semantics=("parallel",),
            vmem_limit_bytes=vmem_limit),
    )(dec_fea, encoder_outputs, enc_feat, mask, cov, p["attn_par"])

    return c_t, attn, cov_out


# -----------------------------------------------------------------------------
# Fused x_context + LSTM cell + decode_proj kernel (single shot)
# -----------------------------------------------------------------------------
def _lstm_step_kernel(xin_ref, h_ref, c_ref, wxc_ref, bxc_ref, wih_ref, whh_ref,
                      bg_ref, wdec_ref, bdec_ref,
                      x_ref, hout_ref, cout_ref, dec_ref):
    H = hout_ref.shape[-1]
    x = jnp.dot(xin_ref[...], wxc_ref[...],
                preferred_element_type=jnp.float32) + bxc_ref[...]        # (b, E)
    gates = (jnp.dot(x, wih_ref[...], preferred_element_type=jnp.float32)
             + jnp.dot(h_ref[...], whh_ref[...], preferred_element_type=jnp.float32)
             + bg_ref[...])                                               # (b, 4H)
    i = _sigmoid(gates[:, 0:H])
    f = _sigmoid(gates[:, H:2 * H])
    g = jnp.tanh(gates[:, 2 * H:3 * H])
    o = _sigmoid(gates[:, 3 * H:4 * H])
    c_new = f * c_ref[...] + i * g
    h_new = o * jnp.tanh(c_new)
    # fused decode_proj: dec_fea = [h_new, c_new] @ W_dec.T + b_dec
    wd = wdec_ref[...]                                                    # (2H, 2H)
    dec = (jnp.dot(h_new, wd[0:H, :], preferred_element_type=jnp.float32)
           + jnp.dot(c_new, wd[H:2 * H, :], preferred_element_type=jnp.float32)
           + bdec_ref[...])                                               # (b, 2H)
    x_ref[...] = x
    hout_ref[...] = h_new
    cout_ref[...] = c_new
    dec_ref[...] = dec


def lstm_step(p, x_in, h_prev, c_prev):
    b = x_in.shape[0]
    E, H, n = p["E"], p["H"], p["n"]
    ins = (x_in.astype(jnp.float32), h_prev.astype(jnp.float32),
           c_prev.astype(jnp.float32), p["W_xc_T"], p["b_xc_r"], p["W_ih_T"],
           p["W_hh_T"], p["b_g"], p["W_dec_T"], p["b_dec_r"])
    out_shapes = (
        jax.ShapeDtypeStruct((b, E), jnp.float32),      # x
        jax.ShapeDtypeStruct((b, H), jnp.float32),      # h
        jax.ShapeDtypeStruct((b, H), jnp.float32),      # c
        jax.ShapeDtypeStruct((b, n), jnp.float32),      # dec_fea
    )
    return pl.pallas_call(
        _lstm_step_kernel,
        out_shape=out_shapes,
        grid_spec=pltpu.PrefetchScalarGridSpec(
            num_scalar_prefetch=0,
            grid=(1,),
            in_specs=[_full_spec(a.shape) for a in ins],
            out_specs=[_full_spec(s.shape) for s in out_shapes],
        ),
        compiler_params=pltpu.CompilerParams(dimension_semantics=("arbitrary",)),
    )(*ins)


# -----------------------------------------------------------------------------
# Output head kernel: out1 -> out2 (vocab-tiled) -> softmax, p_gen, scaling
# -----------------------------------------------------------------------------
def _output_head_kernel(outin_ref, pgin_ref, attn_ref, w1_ref, b1_ref,
                        w2_ref, b2_ref, wp_ref, bp_ref,
                        vdist_ref, attnout_ref, pgen_ref, h1_sc, pg_sc):
    v_idx = pl.program_id(0)
    nv = pl.num_programs(0)
    TILE = w2_ref.shape[-1]

    @pl.when(v_idx == 0)
    def _():
        h1_sc[...] = (jnp.dot(outin_ref[...], w1_ref[...],
                              preferred_element_type=jnp.float32) + b1_ref[...])
        pg = jnp.sum(pgin_ref[...] * wp_ref[...], axis=-1, keepdims=True) + bp_ref[...]
        pg_sc[...] = _sigmoid(pg)

    # Logits for this vocab tile; logits stay resident in the (b, V_pad) output.
    start = pl.multiple_of(v_idx * TILE, TILE)
    logits = (jnp.dot(h1_sc[...], w2_ref[...],
                      preferred_element_type=jnp.float32) + b2_ref[...])
    vdist_ref[:, pl.ds(start, TILE)] = logits

    @pl.when(v_idx == nv - 1)
    def _():
        z = vdist_ref[...]                                   # full resident logits
        m = jnp.max(z, axis=-1, keepdims=True)
        ez = jnp.exp(z - m)
        denom = jnp.sum(ez, axis=-1, keepdims=True)
        pg = pg_sc[...]
        vdist_ref[...] = (pg * ez) * pl.reciprocal(denom, approx=False)
        attnout_ref[...] = (1.0 - pg) * attn_ref[...]
        pgen_ref[...] = pg


def output_head(p, out_in, pgen_in, attn_dist):
    b = out_in.shape[0]
    H, V_pad, TILE_V = p["H"], p["V_pad"], p["TILE_V"]
    t_k = attn_dist.shape[1]
    threeH = out_in.shape[1]
    P = pgen_in.shape[1]
    nv = V_pad // TILE_V

    out_shapes = (
        jax.ShapeDtypeStruct((b, V_pad), jnp.float32),   # p_gen * softmax(logits)
        jax.ShapeDtypeStruct((b, t_k), jnp.float32),     # (1 - p_gen) * attn
        jax.ShapeDtypeStruct((b, 1), jnp.float32),       # p_gen
    )
    return pl.pallas_call(
        _output_head_kernel,
        out_shape=out_shapes,
        grid_spec=pltpu.PrefetchScalarGridSpec(
            num_scalar_prefetch=0,
            grid=(nv,),
            in_specs=[
                pl.BlockSpec((b, threeH), lambda v: (0, 0)),     # out_in (resident)
                pl.BlockSpec((b, P), lambda v: (0, 0)),          # pgen_in
                pl.BlockSpec((b, t_k), lambda v: (0, 0)),        # attn
                pl.BlockSpec((threeH, H), lambda v: (0, 0)),     # W_out1.T
                pl.BlockSpec((1, H), lambda v: (0, 0)),          # b_out1
                pl.BlockSpec((H, TILE_V), lambda v: (0, v)),     # W_out2.T tile
                pl.BlockSpec((1, TILE_V), lambda v: (0, v)),     # b_out2 tile
                pl.BlockSpec((1, P), lambda v: (0, 0)),          # W_pgen
                pl.BlockSpec((1, 1), lambda v: (0, 0)),          # b_pgen
            ],
            out_specs=[
                pl.BlockSpec((b, V_pad), lambda v: (0, 0)),      # resident logits/vdist
                pl.BlockSpec((b, t_k), lambda v: (0, 0)),
                pl.BlockSpec((b, 1), lambda v: (0, 0)),
            ],
            scratch_shapes=[pltpu.VMEM((b, H), jnp.float32),
                            pltpu.VMEM((b, 1), jnp.float32)],
        ),
        compiler_params=pltpu.CompilerParams(dimension_semantics=("arbitrary",)),
    )(out_in.astype(jnp.float32), pgen_in.astype(jnp.float32),
      attn_dist.astype(jnp.float32), p["W_out1_T"], p["b_out1_r"],
      p["W_out2_T_pad"], p["b_out2_pad"], p["W_pgen_r"], p["b_pgen_r"])


# -----------------------------------------------------------------------------
# Decoder forward (Pallas kernels + thin JAX glue)
# -----------------------------------------------------------------------------
def decoder_forward(p, y_t_1, s_t_1, encoder_outputs, encoder_feature,
                    enc_padding_mask, c_t_1, extra_zeros, enc_batch_extend_vocab,
                    coverage, step, *, training=True):
    h_prev, c_prev = s_t_1
    V = p["V"]

    if (not training) and step == 0:
        s_t_hat0 = jnp.concatenate([h_prev, c_prev], axis=1)
        _, _, coverage = attention_forward(
            p, encoder_outputs, encoder_feature, enc_padding_mask, coverage,
            s_t_hat=s_t_hat0)

    # TODO(synk): embedding gather is data-dependent; left to XLA (jnp indexing).
    y_emb = p["embedding"][y_t_1]                            # (b, E)
    x_in = jnp.concatenate([c_t_1, y_emb], axis=1)           # (b, 2H+E)

    x, h_new, c_new, dec_fea = lstm_step(p, x_in, h_prev, c_prev)
    s_t = (h_new, c_new)
    s_t_hat = jnp.concatenate([h_new, c_new], axis=1)        # (b, 2H)

    c_t, attn_dist, coverage_next = attention_forward(
        p, encoder_outputs, encoder_feature, enc_padding_mask, coverage,
        dec_fea=dec_fea)
    if training or step > 0:
        coverage = coverage_next

    pgen_in = jnp.concatenate([c_t, s_t_hat, x], axis=1)     # (b, 4H+E)
    out_in = jnp.concatenate([h_new, c_t], axis=1)           # (b, 3H)
    # p_gen * softmax(logits), (1-p_gen) * attn and p_gen all come out of the head.
    vdist_scaled, attn_scaled, p_gen = output_head(p, out_in, pgen_in, attn_dist)
    vocab_dist_ = vdist_scaled[:, :V]

    if extra_zeros is not None:
        vocab_dist_ = jnp.concatenate([vocab_dist_, extra_zeros], axis=1)
    # TODO(synk): pointer-gen scatter_add is a data-dependent scatter; left to XLA.
    b = vocab_dist_.shape[0]
    rows = jnp.broadcast_to(jnp.arange(b)[:, None], enc_batch_extend_vocab.shape)
    final_dist = vocab_dist_.at[rows, enc_batch_extend_vocab].add(attn_scaled)

    return final_dist, s_t, c_t, attn_dist, p_gen, coverage


# -----------------------------------------------------------------------------
# Pure-JAX reference (mirrors the PyTorch forward, uses the raw param dict)
# -----------------------------------------------------------------------------
def attention_ref(params, s_t_hat, encoder_outputs, encoder_feature,
                  enc_padding_mask, coverage):
    b, t_k, n = encoder_outputs.shape
    dec_fea = s_t_hat @ params["W_dec"].T + params["b_dec"]
    dec_exp = jnp.broadcast_to(dec_fea[:, None, :], (b, t_k, n)).reshape(-1, n)
    att = encoder_feature + dec_exp
    att = att + coverage.reshape(-1, 1) @ params["W_c"].T
    e = jnp.tanh(att)
    scores = (e @ params["v"].T).reshape(b, t_k)
    attn_ = jax.nn.softmax(scores, axis=1) * enc_padding_mask
    attn = attn_ / attn_.sum(1, keepdims=True)
    c_t = jnp.einsum("bk,bkn->bn", attn, encoder_outputs)
    return c_t, attn, coverage + attn


def decoder_ref(params, y_t_1, s_t_1, encoder_outputs, encoder_feature,
                enc_padding_mask, c_t_1, extra_zeros, enc_batch_extend_vocab,
                coverage, step, *, training=True):
    h_prev, c_prev = s_t_1
    H = h_prev.shape[1]
    if (not training) and step == 0:
        s_t_hat = jnp.concatenate([h_prev, c_prev], axis=1)
        _, _, coverage = attention_ref(params, s_t_hat, encoder_outputs,
                                       encoder_feature, enc_padding_mask, coverage)
    y_emb = params["embedding"][y_t_1]
    x = jnp.concatenate([c_t_1, y_emb], axis=1) @ params["W_xc"].T + params["b_xc"]
    gates = (x @ params["W_ih"].T + h_prev @ params["W_hh"].T
             + params["b_ih"] + params["b_hh"])
    i = _sigmoid(gates[:, 0:H]); f = _sigmoid(gates[:, H:2 * H])
    g = jnp.tanh(gates[:, 2 * H:3 * H]); o = _sigmoid(gates[:, 3 * H:4 * H])
    c_new = f * c_prev + i * g
    h_new = o * jnp.tanh(c_new)
    s_t_hat = jnp.concatenate([h_new, c_new], axis=1)
    c_t, attn_dist, coverage_next = attention_ref(
        params, s_t_hat, encoder_outputs, encoder_feature, enc_padding_mask, coverage)
    if training or step > 0:
        coverage = coverage_next
    p_gen = _sigmoid(jnp.concatenate([c_t, s_t_hat, x], axis=1) @ params["W_pgen"].T
                     + params["b_pgen"])
    out = jnp.concatenate([h_new, c_t], axis=1) @ params["W_out1"].T + params["b_out1"]
    out = out @ params["W_out2"].T + params["b_out2"]
    vocab_dist = jax.nn.softmax(out, axis=1)
    vocab_dist_ = p_gen * vocab_dist
    attn_dist_ = (1.0 - p_gen) * attn_dist
    if extra_zeros is not None:
        vocab_dist_ = jnp.concatenate([vocab_dist_, extra_zeros], axis=1)
    b = vocab_dist_.shape[0]
    rows = jnp.broadcast_to(jnp.arange(b)[:, None], enc_batch_extend_vocab.shape)
    final_dist = vocab_dist_.at[rows, enc_batch_extend_vocab].add(attn_dist_)
    return final_dist, (h_new, c_new), c_t, attn_dist, p_gen, coverage


def _check(out, ref, tag, atol, rtol):
    final, (h, c), ct, attn, pg, cov = out
    final_r, (h_r, c_r), ct_r, attn_r, pg_r, cov_r = ref
    pairs = [(final, final_r, "final_dist"), (h, h_r, "h"), (c, c_r, "c"),
             (ct, ct_r, "c_t"), (attn, attn_r, "attn"), (pg, pg_r, "p_gen"),
             (cov, cov_r, "coverage")]
    for got, want, name in pairs:
        assert jnp.allclose(got, want, rtol=rtol, atol=atol), f"{tag}:{name}"


if __name__ == "__main__":
    key = jax.random.PRNGKey(0)
    H, E, V = 16, 32, 50          # hidden_dim, emb_dim, vocab_size
    b, t_k = 2, 8
    n = 2 * H
    n_extra = 3

    keys = list(jax.random.split(key, 32))
    ki = iter(keys)

    def nrm(shape, scale=0.1):
        return jax.random.normal(next(ki), shape, jnp.float32) * scale

    raw_params = {
        "embedding": nrm((V + 1, E)),
        "W_xc": nrm((E, n + E)), "b_xc": nrm((E,)),
        "W_ih": nrm((4 * H, E)), "W_hh": nrm((4 * H, H)),
        "b_ih": nrm((4 * H,)), "b_hh": nrm((4 * H,)),
        "W_dec": nrm((n, n)), "b_dec": nrm((n,)),
        "W_c": nrm((n, 1)), "v": nrm((1, n)),
        "W_pgen": nrm((1, 2 * n + E)), "b_pgen": nrm((1,)),
        "W_out1": nrm((H, 3 * H)), "b_out1": nrm((H,)),
        "W_out2": nrm((V, H)), "b_out2": nrm((V,)),
    }
    params = prepare_decoder_params(raw_params)   # one-time transposes / padding

    y_t_1 = jax.random.randint(next(ki), (b,), 0, V + 1)
    h0 = nrm((b, H), 1.0)
    c0 = nrm((b, H), 1.0)
    encoder_outputs = nrm((b, t_k, n), 1.0)
    encoder_feature = nrm((b * t_k, n), 1.0)
    enc_padding_mask = jnp.concatenate(
        [jnp.ones((b, 6), jnp.float32), jnp.zeros((b, t_k - 6), jnp.float32)], axis=1)
    c_t_1 = nrm((b, n), 1.0)
    extra_zeros = jnp.zeros((b, n_extra), jnp.float32)
    enc_batch_extend_vocab = jax.random.randint(next(ki), (b, t_k), 0, V + n_extra)
    coverage = jax.random.uniform(next(ki), (b, t_k), dtype=jnp.float32)

    common = (y_t_1, (h0, c0))
    tail = (enc_padding_mask, c_t_1, extra_zeros, enc_batch_extend_vocab, coverage)

    # bf16-stored encoder tensors (the memory-bound lever); reference sees the
    # identically-rounded values so only implementation-level error remains.
    eo_bf16 = encoder_outputs.astype(jnp.bfloat16)
    ef_bf16 = encoder_feature.astype(jnp.bfloat16)

    # References first (so any in-place coverage aliasing cannot interact).
    ref_f32 = decoder_ref(raw_params, *common, encoder_outputs, encoder_feature,
                          *tail, step=3, training=True)
    ref_eval = decoder_ref(raw_params, *common, encoder_outputs, encoder_feature,
                           *tail, step=0, training=False)
    ref_bf16 = decoder_ref(raw_params, *common, eo_bf16.astype(jnp.float32),
                           ef_bf16.astype(jnp.float32), *tail, step=3, training=True)

    out_f32 = decoder_forward(params, *common, encoder_outputs, encoder_feature,
                              *tail, step=3, training=True)
    jax.block_until_ready(out_f32)
    _check(out_f32, ref_f32, "f32_train", atol=1e-5, rtol=1e-5)

    out_eval = decoder_forward(params, *common, encoder_outputs, encoder_feature,
                               *tail, step=0, training=False)
    jax.block_until_ready(out_eval)
    _check(out_eval, ref_eval, "f32_eval_step0", atol=1e-5, rtol=1e-5)

    out_bf16 = decoder_forward(params, *common, eo_bf16, ef_bf16,
                               *tail, step=3, training=True)
    jax.block_until_ready(out_bf16)
    _check(out_bf16, ref_bf16, "bf16_storage", atol=1e-4, rtol=1e-4)

    print("KERNEL_OK")
</pallas_src>

<mosaic_0001>
module attributes {stable_mosaic.version = 11 : i64} {
  func.func @_lstm_step_kernel(%arg0: i32, %arg1: memref<2x64xf32, #tpu.memory_space<vmem>>, %arg2: memref<2x16xf32, #tpu.memory_space<vmem>>, %arg3: memref<2x16xf32, #tpu.memory_space<vmem>>, %arg4: memref<64x32xf32, #tpu.memory_space<vmem>>, %arg5: memref<1x32xf32, #tpu.memory_space<vmem>>, %arg6: memref<32x64xf32, #tpu.memory_space<vmem>>, %arg7: memref<16x64xf32, #tpu.memory_space<vmem>>, %arg8: memref<1x64xf32, #tpu.memory_space<vmem>>, %arg9: memref<32x32xf32, #tpu.memory_space<vmem>>, %arg10: memref<1x32xf32, #tpu.memory_space<vmem>>, %arg11: memref<2x32xf32, #tpu.memory_space<vmem>>, %arg12: memref<2x16xf32, #tpu.memory_space<vmem>>, %arg13: memref<2x16xf32, #tpu.memory_space<vmem>>, %arg14: memref<2x32xf32, #tpu.memory_space<vmem>>) attributes {dimension_semantics = [#tpu.dimension_semantics<arbitrary>], iteration_bounds = array<i64: 1>, scalar_prefetch = 0 : i64, scratch_operands = 0 : i64, tpu.core_type = #tpu.core_type<tc>, window_params = [{pipeline_mode = #tpu.pipeline_mode<synchronous>, transform_indices = @transform_0, window_bounds = array<i64: 2, 64>}, {pipeline_mode = #tpu.pipeline_mode<synchronous>, transform_indices = @transform_1, window_bounds = array<i64: 2, 16>}, {pipeline_mode = #tpu.pipeline_mode<synchronous>, transform_indices = @transform_2, window_bounds = array<i64: 2, 16>}, {pipeline_mode = #tpu.pipeline_mode<synchronous>, transform_indices = @transform_3, window_bounds = array<i64: 64, 32>}, {pipeline_mode = #tpu.pipeline_mode<synchronous>, transform_indices = @transform_4, window_bounds = array<i64: 1, 32>}, {pipeline_mode = #tpu.pipeline_mode<synchronous>, transform_indices = @transform_5, window_bounds = array<i64: 32, 64>}, {pipeline_mode = #tpu.pipeline_mode<synchronous>, transform_indices = @transform_6, window_bounds = array<i64: 16, 64>}, {pipeline_mode = #tpu.pipeline_mode<synchronous>, transform_indices = @transform_7, window_bounds = array<i64: 1, 64>}, {pipeline_mode = #tpu.pipeline_mode<synchronous>, transform_indices = @transform_8, window_bounds = array<i64: 32, 32>}, {pipeline_mode = #tpu.pipeline_mode<synchronous>, transform_indices = @transform_9, window_bounds = array<i64: 1, 32>}, {pipeline_mode = #tpu.pipeline_mode<synchronous>, transform_indices = @transform_10, window_bounds = array<i64: 2, 32>}, {pipeline_mode = #tpu.pipeline_mode<synchronous>, transform_indices = @transform_11, window_bounds = array<i64: 2, 16>}, {pipeline_mode = #tpu.pipeline_mode<synchronous>, transform_indices = @transform_12, window_bounds = array<i64: 2, 16>}, {pipeline_mode = #tpu.pipeline_mode<synchronous>, transform_indices = @transform_13, window_bounds = array<i64: 2, 32>}]} {
    %c0 = arith.constant 0 : index
    %c0_0 = arith.constant 0 : index
    %0 = vector.load %arg1[%c0, %c0_0] : memref<2x64xf32, #tpu.memory_space<vmem>>, vector<2x64xf32>
    %c0_1 = arith.constant 0 : index
    %c0_2 = arith.constant 0 : index
    %1 = vector.load %arg4[%c0_1, %c0_2] : memref<64x32xf32, #tpu.memory_space<vmem>>, vector<64x32xf32>
    %cst = arith.constant dense<0.000000e+00> : vector<2x32xf32>
    %2 = tpu.matmul %0, %1, %cst {dimension_numbers = #tpu.dot_dimension_numbers<[1], [0], [0], [1], [0, 0, 1, 1], [], []>} : vector<2x64xf32>, vector<64x32xf32>, vector<2x32xf32> -> vector<2x32xf32>
    %c0_3 = arith.constant 0 : index
    %c0_4 = arith.constant 0 : index
    %3 = vector.load %arg5[%c0_3, %c0_4] : memref<1x32xf32, #tpu.memory_space<vmem>>, vector<1x32xf32>
    %4 = vector.broadcast %3 : vector<1x32xf32> to vector<2x32xf32>
    %5 = arith.addf %2, %4 : vector<2x32xf32>
    %c0_5 = arith.constant 0 : index
    %c0_6 = arith.constant 0 : index
    %6 = vector.load %arg6[%c0_5, %c0_6] : memref<32x64xf32, #tpu.memory_space<vmem>>, vector<32x64xf32>
    %cst_7 = arith.constant dense<0.000000e+00> : vector<2x64xf32>
    %7 = tpu.matmul %5, %6, %cst_7 {dimension_numbers = #tpu.dot_dimension_numbers<[1], [0], [0], [1], [0, 0, 1, 1], [], []>} : vector<2x32xf32>, vector<32x64xf32>, vector<2x64xf32> -> vector<2x64xf32>
    %c0_8 = arith.constant 0 : index
    %c0_9 = arith.constant 0 : index
    %8 = vector.load %arg2[%c0_8, %c0_9] : memref<2x16xf32, #tpu.memory_space<vmem>>, vector<2x16xf32>
    %c0_10 = arith.constant 0 : index
    %c0_11 = arith.constant 0 : index
    %9 = vector.load %arg7[%c0_10, %c0_11] : memref<16x64xf32, #tpu.memory_space<vmem>>, vector<16x64xf32>
    %cst_12 = arith.constant dense<0.000000e+00> : vector<2x64xf32>
    %10 = tpu.matmul %8, %9, %cst_12 {dimension_numbers = #tpu.dot_dimension_numbers<[1], [0], [0], [1], [0, 0, 1, 1], [], []>} : vector<2x16xf32>, vector<16x64xf32>, vector<2x64xf32> -> vector<2x64xf32>
    %11 = arith.addf %7, %10 : vector<2x64xf32>
    %c0_13 = arith.constant 0 : index
    %c0_14 = arith.constant 0 : index
    %12 = vector.load %arg8[%c0_13, %c0_14] : memref<1x64xf32, #tpu.memory_space<vmem>>, vector<1x64xf32>
    %13 = vector.broadcast %12 : vector<1x64xf32> to vector<2x64xf32>
    %14 = arith.addf %11, %13 : vector<2x64xf32>
    %15 = vector.extract_strided_slice %14 {offsets = [0, 0], sizes = [2, 16], strides = [1, 1]} : vector<2x64xf32> to vector<2x16xf32>
    %cst_15 = arith.constant 0.000000e+00 : f32
    %16 = vector.broadcast %cst_15 : f32 to vector<2x16xf32>
    %17 = arith.subf %16, %15 : vector<2x16xf32>
    %18 = math.exp %17 : vector<2x16xf32>
    %cst_16 = arith.constant 1.000000e+00 : f32
    %19 = vector.broadcast %cst_16 : f32 to vector<2x16xf32>
    %20 = arith.addf %19, %18 : vector<2x16xf32>
    %cst_17 = arith.constant 1.000000e+00 : f32
    %21 = vector.broadcast %cst_17 : f32 to vector<2x16xf32>
    %22 = arith.divf %21, %20 : vector<2x16xf32>
    %23 = vector.extract_strided_slice %14 {offsets = [0, 16], sizes = [2, 16], strides = [1, 1]} : vector<2x64xf32> to vector<2x16xf32>
    %cst_18 = arith.constant 0.000000e+00 : f32
    %24 = vector.broadcast %cst_18 : f32 to vector<2x16xf32>
    %25 = arith.subf %24, %23 : vector<2x16xf32>
    %26 = math.exp %25 : vector<2x16xf32>
    %cst_19 = arith.constant 1.000000e+00 : f32
    %27 = vector.broadcast %cst_19 : f32 to vector<2x16xf32>
    %28 = arith.addf %27, %26 : vector<2x16xf32>
    %cst_20 = arith.constant 1.000000e+00 : f32
    %29 = vector.broadcast %cst_20 : f32 to vector<2x16xf32>
    %30 = arith.divf %29, %28 : vector<2x16xf32>
    %31 = vector.extract_strided_slice %14 {offsets = [0, 32], sizes = [2, 16], strides = [1, 1]} : vector<2x64xf32> to vector<2x16xf32>
    %32 = math.tanh %31 : vector<2x16xf32>
    %33 = vector.extract_strided_slice %14 {offsets = [0, 48], sizes = [2, 16], strides = [1, 1]} : vector<2x64xf32> to vector<2x16xf32>
    %cst_21 = arith.constant 0.000000e+00 : f32
    %34 = vector.broadcast %cst_21 : f32 to vector<2x16xf32>
    %35 = arith.subf %34, %33 : vector<2x16xf32>
    %36 = math.exp %35 : vector<2x16xf32>
    %cst_22 = arith.constant 1.000000e+00 : f32
    %37 = vector.broadcast %cst_22 : f32 to vector<2x16xf32>
    %38 = arith.addf %37, %36 : vector<2x16xf32>
    %cst_23 = arith.constant 1.000000e+00 : f32
    %39 = vector.broadcast %cst_23 : f32 to vector<2x16xf32>
    %40 = arith.divf %39, %38 : vector<2x16xf32>
    %c0_24 = arith.constant 0 : index
    %c0_25 = arith.constant 0 : index
    %41 = vector.load %arg3[%c0_24, %c0_25] : memref<2x16xf32, #tpu.memory_space<vmem>>, vector<2x16xf32>
    %42 = arith.mulf %30, %41 : vector<2x16xf32>
    %43 = arith.mulf %22, %32 : vector<2x16xf32>
    %44 = arith.addf %42, %43 : vector<2x16xf32>
    %45 = math.tanh %44 : vector<2x16xf32>
    %46 = arith.mulf %40, %45 : vector<2x16xf32>
    %c0_26 = arith.constant 0 : index
    %c0_27 = arith.constant 0 : index
    %47 = vector.load %arg9[%c0_26, %c0_27] : memref<32x32xf32, #tpu.memory_space<vmem>>, vector<32x32xf32>
    %48 = vector.extract_strided_slice %47 {offsets = [0, 0], sizes = [16, 32], strides = [1, 1]} : vector<32x32xf32> to vector<16x32xf32>
    %cst_28 = arith.constant dense<0.000000e+00> : vector<2x32xf32>
    %49 = tpu.matmul %46, %48, %cst_28 {dimension_numbers = #tpu.dot_dimension_numbers<[1], [0], [0], [1], [0, 0, 1, 1], [], []>} : vector<2x16xf32>, vector<16x32xf32>, vector<2x32xf32> -> vector<2x32xf32>
    %50 = vector.extract_strided_slice %47 {offsets = [16, 0], sizes = [16, 32], strides = [1, 1]} : vector<32x32xf32> to vector<16x32xf32>
    %cst_29 = arith.constant dense<0.000000e+00> : vector<2x32xf32>
    %51 = tpu.matmul %44, %50, %cst_29 {dimension_numbers = #tpu.dot_dimension_numbers<[1], [0], [0], [1], [0, 0, 1, 1], [], []>} : vector<2x16xf32>, vector<16x32xf32>, vector<2x32xf32> -> vector<2x32xf32>
    %52 = arith.addf %49, %51 : vector<2x32xf32>
    %c0_30 = arith.constant 0 : index
    %c0_31 = arith.constant 0 : index
    %53 = vector.load %arg10[%c0_30, %c0_31] : memref<1x32xf32, #tpu.memory_space<vmem>>, vector<1x32xf32>
    %54 = vector.broadcast %53 : vector<1x32xf32> to vector<2x32xf32>
    %55 = arith.addf %52, %54 : vector<2x32xf32>
    %c0_32 = arith.constant 0 : index
    %c0_33 = arith.constant 0 : index
    %56 = vector.load %arg11[%c0_32, %c0_33] : memref<2x32xf32, #tpu.memory_space<vmem>>, vector<2x32xf32>
    tpu.vector_store %arg11[%c0_32, %c0_33], %5 {strides = array<i32>} : memref<2x32xf32, #tpu.memory_space<vmem>>, vector<2x32xf32>,
    %c0_34 = arith.constant 0 : index
    %c0_35 = arith.constant 0 : index
    %57 = vector.load %arg12[%c0_34, %c0_35] : memref<2x16xf32, #tpu.memory_space<vmem>>, vector<2x16xf32>
    tpu.vector_store %arg12[%c0_34, %c0_35], %46 {strides = array<i32>} : memref<2x16xf32, #tpu.memory_space<vmem>>, vector<2x16xf32>,
    %c0_36 = arith.constant 0 : index
    %c0_37 = arith.constant 0 : index
    %58 = vector.load %arg13[%c0_36, %c0_37] : memref<2x16xf32, #tpu.memory_space<vmem>>, vector<2x16xf32>
    tpu.vector_store %arg13[%c0_36, %c0_37], %44 {strides = array<i32>} : memref<2x16xf32, #tpu.memory_space<vmem>>, vector<2x16xf32>,
    %c0_38 = arith.constant 0 : index
    %c0_39 = arith.constant 0 : index
    %59 = vector.load %arg14[%c0_38, %c0_39] : memref<2x32xf32, #tpu.memory_space<vmem>>, vector<2x32xf32>
    tpu.vector_store %arg14[%c0_38, %c0_39], %55 {strides = array<i32>} : memref<2x32xf32, #tpu.memory_space<vmem>>, vector<2x32xf32>,
    return
  }
  func.func @transform_0(%arg0: i32) -> (i32, i32) {
    %c0_i32 = arith.constant 0 : i32
    %c0_i32_0 = arith.constant 0 : i32
    %c0_i32_1 = arith.constant 0 : i32
    return %c0_i32, %c0_i32_0 : i32, i32
  }
  func.func @transform_1(%arg0: i32) -> (i32, i32) {
    %c0_i32 = arith.constant 0 : i32
    %c0_i32_0 = arith.constant 0 : i32
    %c0_i32_1 = arith.constant 0 : i32
    return %c0_i32, %c0_i32_0 : i32, i32
  }
  func.func @transform_2(%arg0: i32) -> (i32, i32) {
    %c0_i32 = arith.constant 0 : i32
    %c0_i32_0 = arith.constant 0 : i32
    %c0_i32_1 = arith.constant 0 : i32
    return %c0_i32, %c0_i32_0 : i32, i32
  }
  func.func @transform_3(%arg0: i32) -> (i32, i32) {
    %c0_i32 = arith.constant 0 : i32
    %c0_i32_0 = arith.constant 0 : i32
    %c0_i32_1 = arith.constant 0 : i32
    return %c0_i32, %c0_i32_0 : i32, i32
  }
  func.func @transform_4(%arg0: i32) -> (i32, i32) {
    %c0_i32 = arith.constant 0 : i32
    %c0_i32_0 = arith.constant 0 : i32
    %c0_i32_1 = arith.constant 0 : i32
    return %c0_i32, %c0_i32_0 : i32, i32
  }
  func.func @transform_5(%arg0: i32) -> (i32, i32) {
    %c0_i32 = arith.constant 0 : i32
    %c0_i32_0 = arith.constant 0 : i32
    %c0_i32_1 = arith.constant 0 : i32
    return %c0_i32, %c0_i32_0 : i32, i32
  }
  func.func @transform_6(%arg0: i32) -> (i32, i32) {
    %c0_i32 = arith.constant 0 : i32
    %c0_i32_0 = arith.constant 0 : i32
    %c0_i32_1 = arith.constant 0 : i32
    return %c0_i32, %c0_i32_0 : i32, i32
  }
  func.func @transform_7(%arg0: i32) -> (i32, i32) {
    %c0_i32 = arith.constant 0 : i32
    %c0_i32_0 = arith.constant 0 : i32
    %c0_i32_1 = arith.constant 0 : i32
    return %c0_i32, %c0_i32_0 : i32, i32
  }
  func.func @transform_8(%arg0: i32) -> (i32, i32) {
    %c0_i32 = arith.constant 0 : i32
    %c0_i32_0 = arith.constant 0 : i32
    %c0_i32_1 = arith.constant 0 : i32
    return %c0_i32, %c0_i32_0 : i32, i32
  }
  func.func @transform_9(%arg0: i32) -> (i32, i32) {
    %c0_i32 = arith.constant 0 : i32
    %c0_i32_0 = arith.constant 0 : i32
    %c0_i32_1 = arith.constant 0 : i32
    return %c0_i32, %c0_i32_0 : i32, i32
  }
  func.func @transform_10(%arg0: i32) -> (i32, i32) {
    %c0_i32 = arith.constant 0 : i32
    %c0_i32_0 = arith.constant 0 : i32
    %c0_i32_1 = arith.constant 0 : i32
    return %c0_i32, %c0_i32_0 : i32, i32
  }
  func.func @transform_11(%arg0: i32) -> (i32, i32) {
    %c0_i32 = arith.constant 0 : i32
    %c0_i32_0 = arith.constant 0 : i32
    %c0_i32_1 = arith.constant 0 : i32
    return %c0_i32, %c0_i32_0 : i32, i32
  }
  func.func @transform_12(%arg0: i32) -> (i32, i32) {
    %c0_i32 = arith.constant 0 : i32
    %c0_i32_0 = arith.constant 0 : i32
    %c0_i32_1 = arith.constant 0 : i32
    return %c0_i32, %c0_i32_0 : i32, i32
  }
  func.func @transform_13(%arg0: i32) -> (i32, i32) {
    %c0_i32 = arith.constant 0 : i32
    %c0_i32_0 = arith.constant 0 : i32
    %c0_i32_1 = arith.constant 0 : i32
    return %c0_i32, %c0_i32_0 : i32, i32
  }
}

</mosaic_0001>

<bundles_post_ra>
// kernel: tpu_custom_call.1
= control target key start
LH: loop header
LB: loop body
LE: loop exit
PB: predicated region body
PF: predicated region fallthrough
CT: control target
= control target key end

     0   :  { %19 = vsyncpa [#allocation3], 0  ;;  %s934_s0 = inlined_call_operand.vmem [shape: f32[2,64], index: 0, kind: input, shape index: {}]   ;;  %s935_s1 = inlined_call_operand.vmem [shape: f32[2,16], index: 1, kind: input, shape index: {}]   ;;  %s936_s2 = inlined_call_operand.vmem [shape: f32[2,16], index: 2, kind: input, shape index: {}]   ;;  %s937_s3 = inlined_call_operand.vmem [shape: f32[64,32], index: 3, kind: input, shape index: {}]   ;;  %s938_s4 = inlined_call_operand.vmem [shape: f32[1,32], index: 4, kind: input, shape index: {}]   ;;  %s939_s5 = inlined_call_operand.vmem [shape: f32[32,64], index: 5, kind: input, shape index: {}]   ;;  %s940_s6 = inlined_call_operand.vmem [shape: f32[16,64], index: 6, kind: input, shape index: {}]   ;;  %s941_s7 = inlined_call_operand.vmem [shape: f32[1,64], index: 7, kind: input, shape index: {}]   ;;  %s942_s8 = inlined_call_operand.vmem [shape: f32[32,32], index: 8, kind: input, shape index: {}]   ;;  %s943_s9 = inlined_call_operand.vmem [shape: f32[1,32], index: 9, kind: input, shape index: {}]   ;;  %s944_s10 = inlined_call_operand.hbm [shape: f32[2,32], index: 10, kind: output, shape index: {0}]   ;;  %s945_s11 = inlined_call_operand.hbm [shape: f32[2,16], index: 11, kind: output, shape index: {1}]   ;;  %s946_s12 = inlined_call_operand.hbm [shape: f32[2,16], index: 12, kind: output, shape index: {2}]   ;;  %s947_s13 = inlined_call_operand.hbm [shape: f32[2,32], index: 13, kind: output, shape index: {3}]  }
   0x1   :  { %20 = vsyncpa [#allocation5], 0  ;;  %v50_v0 = vld [vmem:[%s937_s3 + $0x38] sm:$0xff]  ;;  %v736_v1 = vmov 0.0   ;;  %v49_v2 = vld [vmem:[%s937_s3 + $0x30] sm:$0xff]  ;;  %vm737_vm0 = vmmov 0  }
   0x2   :  { %580 = vmatprep.subr.mxu0 %v736_v1  ;;  %596 = vmatprep.mubr.msk.f32.mxu0 %vm737_vm0, %v736_v1  ;;  %v48_v3 = vld [vmem:[%s937_s3 + $0x28] sm:$0xff]  ;;  %v137_v5 = vld [vmem:[%s940_s6] sm:$0xff]  ;;  %vm139_vm1 = vcmask 130048  }
   0x3   :  { %581 = vmatpush3.msra.mxu0 %v50_v0  ;;  %599 = vmatprep.subr.mxu1 %v736_v1  ;;  %v138_v4 = vld [vmem:[%s940_s6 + $0x8] sm:$0xff]  ;;  %v136_v6 = vld [vmem:[%s935_s1] sm:$0x3] }
   0x4   :  { %582 = vmatprep.subr.mxu0 %v736_v1  ;;  %603 = vmatprep.mubr.msk.f32.mxu1 %vm737_vm0, %v736_v1  ;;  %v47_v7 = vld [vmem:[%s937_s3 + $0x20] sm:$0xff] }
   0x5   :  { %583 = vmatpush3.msra.mxu0 %v49_v2  ;;  %600 = vmatpush3.msra.mxu1 %v138_v4 }
   0x6   :  { %584 = vmatprep.subr.mxu0 %v736_v1  ;;  %601 = vmatprep.subr.mxu1 %v736_v1 }
   0x7   :  { %21 = vsyncpa [#allocation8], 0  ;;  %585 = vmatpush3.msra.mxu0 %v48_v3  ;;  %602 = vmatpush3.msra.mxu1 %v137_v5  ;;  %v135_v8 = vld [vmem:[%s939_s5 + $0x18] sm:$0xff]  ;;  %v134_v10 = vld [vmem:[%s939_s5 + $0x10] sm:$0xff]  ;;  %vm58_vm2 = vcmask 523264   ;;  %vm213_vm3 = vcmask 261120  }
   0x8   :  { %586 = vmatprep.subr.mxu0 %v736_v1  ;;  %v46_v9 = vld [vmem:[%s937_s3 + $0x18] sm:$0xff]  ;;  %604 = vmatmul.mubr.msk.f32.vlgmr.msra.gmra.mxu1 %vm139_vm1, %v136_v6  ;;  %v45_v11 = vld [vmem:[%s937_s3 + $0x10] sm:$0xff]  ;;  %v44_v12 = vld [vmem:[%s937_s3 + $0x8] sm:$0xff]  ;;  %vm486_vm4 = vcmask 254976   ;;  %s739_s23 = smov 16   ;;  %s741_s30 = smov 32  }
   0x9   :  { %587 = vmatpush3.msra.mxu0 %v47_v7  ;;  %606 = vmatprep.subr.mxu1 %v736_v1  ;;  %v43_v13 = vld [vmem:[%s937_s3] sm:$0xff]  ;;  %v133_v15 = vld [vmem:[%s939_s5 + $0x8] sm:$0xff]  ;;  %v327_v37 = vld [vmem:[%s942_s8 + $0x18] sm:$0xff]  ;;  %vm489_vm5 = vcmask 123904   ;;  %s742_s14 = smov 80   ;;  %s744_s16 = smov [#allocation2]  }
   0xa   :  { %588 = vmatprep.subr.mxu0 %v736_v1  ;;  %607 = vmatpush3.msra.mxu1 %v135_v8  ;;  %v42_v14 = vld [vmem:[%s934_s0] sm:$0x3]  ;;  %v326_v38 = vld [vmem:[%s942_s8 + $0x10] sm:$0xff]  ;;  %v325_v43 = vld [vmem:[%s942_s8 + $0x8] sm:$0xff]  ;;  %s500_s17 = sshll.u32 %s744_s16, 4  ;;  %s501_s17 = int_to_ptr.vmem [resolvable:$true] %s500_s17 }
   0xb   :  { %589 = vmatpush3.msra.mxu0 %v46_v9  ;;  %608 = vmatprep.subr.mxu1 %v736_v1  ;;  %v132_v16 = vld [vmem:[%s939_s5] sm:$0xff] }
   0xc   :  { %590 = vmatprep.subr.mxu0 %v736_v1  ;;  %609 = vmatpush3.msra.mxu1 %v134_v10  ;;  %v549_v19 = vld [vmem:[%s938_s4] ss:$0 sm:$0xff]  ;;  %s738_s4 = smov 96  }
   0xd   :  { %591 = vmatpush3.msra.mxu0 %v45_v11  ;;  %610 = vmatprep.subr.mxu1 %v736_v1  ;;  %v553_v24 = vld [vmem:[%s941_s7] ss:$0 sm:$0xff] }
   0xe   :  { %592 = vmatprep.subr.mxu0 %v736_v1  ;;  %614 = vmatprep.mubr.msk.f32.mxu1 %vm737_vm0, %v736_v1  ;;  %v302_v29 = vld [vmem:[%s936_s2] sm:$0x3]  ;;  %s740_s2 = smov 112  }
   0xf   :  { %593 = vmatpush3.msra.mxu0 %v44_v12  ;;  %611 = vmatpush3.msra.mxu1 %v133_v15  ;;  %v324_v44 = vld [vmem:[%s942_s8] sm:$0xff]  ;;  %s743_s8 = smov [#allocation4]  }
  0x10   :  { %594 = vmatprep.subr.mxu0 %v736_v1  ;;  %612 = vmatprep.subr.mxu1 %v736_v1  ;;  %s510_s15 = sshll.u32 %s743_s8, 4  ;;  %s511_s15 = int_to_ptr.vmem [resolvable:$true] %s510_s15 }
  0x11   :  { %595 = vmatpush3.msra.mxu0 %v43_v13  ;;  %613 = vmatpush3.msra.mxu1 %v132_v16  ;;  %s650_s3 = scalar_lea.vmem %s511_s15, 32  ;;  %p655_p1 = scmp.lt.s32.totalorder %s511_s15, %s511_s15 }
  0x12   :  { %597 = vmatmul.mubr.msk.f32.vlgmr.msra.gmra.mxu0 %vm58_vm2, %v42_v14  ;;  %624 = vmatprep.subr.mxu0 %v736_v1  ;;  %p651_p0 = scmp.ne.s32.totalorder %s511_s15, %s650_s3  ;;  %p656_p2 = scmp.lt.s32.totalorder %s650_s3, %s650_s3 }
  0x13   :  { %628 = vmatprep.mubr.msk.f32.mxu0 %vm737_vm0, %v736_v1  ;;  %617 = vmatprep.subr.mxu1 %v736_v1 }
  0x14   :  { %625 = vmatpush3.msra.mxu0 %v325_v43  ;;  %p657_p3 = por %p656_p2, %p655_p1 }
  0x15   :  { %626 = vmatprep.subr.mxu0 %v736_v1 }
  0x16   :  { %627 = vmatpush3.msra.mxu0 %v324_v44  ;;  %p658_p4 = pnand %p657_p3, %p651_p0 }
  0xc8   :  { %v209_v17 = vpop.f32.mrf.mxu1 }
  0xca   :  { %v605_v18 = vpop.f32.mrf.mxu1 }
  0xd2   :  { %v128_v20 = vpop.f32.mrf.mxu0 }
  0xd3   :  { %v129_v21 = vadd.f32 %v549_v19, %v128_v20 }
  0xd4   :  { %v598_v22 = vpop.f32.mrf.mxu0 }
  0xd5   :  { %615 = vmatmul.mubr.msk.f32.vlgmr.msra.gmra.mxu1 %vm213_vm3, %v129_v21  ;;  %487 = vst.msk [vmem:[#allocation2] sm:$0x3] %vm486_vm4, %v129_v21 }
  0xd6   :  { %621 = vmatprep.mubr.msk.f32.mxu1 %vm737_vm0, %v736_v1  ;;  %618 = vmatpush3.msra.mxu1 %v327_v37 }
  0xd7   :  { %619 = vmatprep.subr.mxu1 %v736_v1 }
  0xd8   :  { %620 = vmatpush3.msra.mxu1 %v326_v38 }
 0x195   :  { %v283_v23 = vpop.f32.mrf.mxu1 }
 0x196   :  { %v284_v25 = vadd.f32 %v283_v23, %v209_v17 }
 0x197   :  { %v616_v26 = vpop.f32.mrf.mxu1 }
 0x198   :  { %v294_v27 = vadd.f32 %v553_v24, %v284_v25 }
 0x19a   :  { %642 = vtanh.f32 %v294_v27  ;;  %v295_v30 = vsub.f32 0.0, %v294_v27 }
 0x19c   :  { %v296_v31 = vmul.f32 1.442695, %v295_v30 }
 0x19e   :  { %644 = vpow2.f32 %v296_v31 }
 0x1a7   :  { %v643_v28 = vpop.eup %642 }
 0x1a8   :  { %309 = vrot.lane.b32.xlu0 %v643_v28, %s738_s4 }
 0x1ab   :  { %v645_v32 = vpop.eup %644 }
 0x1ac   :  { %304 = vrot.lane.b32.xlu0 %v302_v29, %s739_s23  ;;  %v298_v33 = vadd.f32 1.0, %v645_v32 }
 0x1ae   :  { %646 = vrcp.f32 %v298_v33 }
 0x1bb   :  { %v647_v34 = vpop.eup %646 }
 0x21a   :  { %v310_v35 = vpop.permute.xlu0 %309 }
 0x21b   :  { %v312_v36 = vmul.f32 %v647_v34, %v310_v35 }
 0x21d   :  { %314 = vrot.lane.b32.xlu1 %v312_v36, %s739_s23 }
 0x21e   :  { %v305_v39 = vpop.permute.xlu0 %304 }
 0x21f   :  { %v307_v40 = vmul.f32 %v647_v34, %v305_v39 }
 0x28f   :  { %v315_v41 = vpop.permute.xlu1 %314 }
 0x290   :  { %v317_v42 = vadd.f32 %v315_v41, %v307_v40 }
 0x292   :  { %648 = vtanh.f32 %v317_v42  ;;  %329 = vrot.lane.b32.xlu0 %v317_v42, %s740_s2 }
 0x29f   :  { %v649_v45 = vpop.eup %648 }
 0x2a0   :  { %320 = vrot.lane.b32.xlu1 %v649_v45, %s741_s30 }
 0x304   :  { %v330_v46 = vpop.permute.xlu0 %329 }
 0x305   :  { %492 = vst.msk [vmem:[#allocation6] sm:$0x3] %vm489_vm5, %v330_v46  ;;  %622 = vmatmul.mubr.msk.f32.vlgmr.msra.gmra.mxu1 %vm139_vm1, %v330_v46 }
 0x312   :  { %v321_v47 = vpop.permute.xlu1 %320 }
 0x313   :  { %v323_v48 = vmul.f32 %v647_v34, %v321_v47 }
 0x315   :  { %404 = vrot.lane.b32.xlu1 %v323_v48, %s742_s14 }
 0x387   :  { %v405_v49 = vpop.permute.xlu1 %404 }
 0x388   :  { %490 = vst.msk [vmem:[#allocation4] sm:$0x3] %vm489_vm5, %v405_v49  ;;  %629 = vmatmul.mubr.msk.f32.vlgmr.msra.gmra.mxu0 %vm139_vm1, %v405_v49 }
 0x3c5   :  { %v399_v50 = vpop.f32.mrf.mxu1 }
 0x3c7   :  { %v623_v51 = vpop.f32.mrf.mxu1 }
 0x3c8   :  { %661 = shalt.err (!%p658_p4)
}
 0x3c9   :  { %513 = dma.vmem_to_hbm [thread:$0]  %s511_s15, 32, %s945_s11, [#allocation5]  }
 0x3ca   :  { %s670_s0 = scalar_lea.vmem %s501_s17, 32  ;;  %p675_p6 = scmp.lt.s32.totalorder %s501_s17, %s501_s17 }
 0x3cb   :  { %p671_p5 = scmp.ne.s32.totalorder %s501_s17, %s670_s0  ;;  %p676_p7 = scmp.lt.s32.totalorder %s670_s0, %s670_s0 }
 0x3cd   :  { %p677_p8 = por %p676_p7, %p675_p6 }
 0x3cf   :  { %p678_p9 = pnand %p677_p8, %p671_p5 }
 0x3d1   :  { %681 = shalt.err (!%p678_p9)
}
 0x3d2   :  { %503 = dma.vmem_to_hbm [thread:$0]  %s501_s17, 32, %s944_s10, [#allocation3]  }
 0x3d3   :  { %s745_s21 = smov [#allocation6]  }
 0x3d4   :  { %s520_s4 = sshll.u32 %s745_s21, 4  ;;  %s521_s4 = int_to_ptr.vmem [resolvable:$true] %s520_s4 }
 0x3d5   :  { %s690_s6 = scalar_lea.vmem %s521_s4, 32  ;;  %p695_p11 = scmp.lt.s32.totalorder %s521_s4, %s521_s4 }
 0x3d6   :  { %p691_p10 = scmp.ne.s32.totalorder %s521_s4, %s690_s6  ;;  %p696_p12 = scmp.lt.s32.totalorder %s690_s6, %s690_s6 }
 0x3d8   :  { %p697_p13 = por %p696_p12, %p695_p11 }
 0x3da   :  { %p698_p0 = pnand %p697_p13, %p691_p10 }
 0x3dc   :  { %701 = shalt.err (!%p698_p0)
}
 0x3dd   :  { %523 = dma.vmem_to_hbm [thread:$0]  %s521_s4, 32, %s946_s12, [#allocation5]   ;;  %v556_v53 = vld [vmem:[%s943_s9] ss:$0 sm:$0xff] }
 0x3de   :  { %s746_s10 = smov [#allocation7]  }
 0x3df   :  { %s530_s1 = sshll.u32 %s746_s10, 4  ;;  %s531_s1 = int_to_ptr.vmem [resolvable:$true] %s530_s1 }
 0x3e0   :  { %s710_s24 = scalar_lea.vmem %s531_s1, 32  ;;  %p715_p2 = scmp.lt.s32.totalorder %s531_s1, %s531_s1 }
 0x3e1   :  { %p711_p1 = scmp.ne.s32.totalorder %s531_s1, %s710_s24  ;;  %p716_p3 = scmp.lt.s32.totalorder %s710_s24, %s710_s24 }
 0x3e3   :  { %p717_p4 = por %p716_p3, %p715_p2 }
 0x3e5   :  { %p718_p5 = pnand %p717_p4, %p711_p1 }
 0x448   :  { %v474_v52 = vpop.f32.mrf.mxu0 }
 0x449   :  { %v475_v54 = vadd.f32 %v474_v52, %v399_v50 }
 0x44a   :  { %v630_v55 = vpop.f32.mrf.mxu0 }
 0x44b   :  { %v485_v56 = vadd.f32 %v556_v53, %v475_v54 }
 0x44d   :  { %493 = vst.msk [vmem:[#allocation7] sm:$0x3] %vm486_vm4, %v485_v56 }
 0x44e   :  { %721 = shalt.err (!%p718_p5)
}
 0x44f   :  { %533 = dma.vmem_to_hbm [thread:$0]  %s531_s1, 32, %s947_s13, [#allocation8]  }
 0x450   :  { %730 = dma.done.wait [#allocation3], 32  }
 0x451   :  { %731 = vsyncadd [#allocation3], 4294967264 }
 0x452   :  { %732 = dma.done.wait [#allocation5], 64  }
 0x453   :  { %733 = vsyncadd [#allocation5], 4294967232 }
 0x454   :  { %734 = dma.done.wait [#allocation8], 32  }
 0x455   :  { %735 = vsyncadd [#allocation8], 4294967264 }
 0x456   :  { %546 = vsyncpa [#allocation3], 1 }
 0x457   :  { %547 = vsyncpa [#allocation5], 1 }
 0x458   :  { %548 = vsyncpa [#allocation8], 1 }

</bundles_post_ra>
